<compile_context>
chip_gen: v7x
topology: tpu7x:2x2x1
jax: 0.10.0
libtpu: 0.0.40
codegen_flags: <defaults>
</compile_context>

<pallas_src>
import functools

import jax
import jax.numpy as jnp
from jax.experimental import pallas as pl
from jax.experimental.pallas import tpu as pltpu


def bert_output_kernel(h_ref, w_ref, b_ref, res_ref, gamma_ref, beta_ref,
                       o_ref, *, eps):
    """Fused: (tm, I) @ (I, H) + bias (+ residual) -> LayerNorm(gamma, beta)."""
    # MXU matmul, f32 accumulation regardless of operand dtype.
    x = jnp.dot(h_ref[...], w_ref[...], preferred_element_type=jnp.float32)
    x = x + b_ref[...].astype(jnp.float32)
    # TODO(synk): dropout is implemented as identity (eval-mode semantics);
    # training-mode RNG dropout cannot match torch's RNG stream exactly.
    x = x + res_ref[...].astype(jnp.float32)

    # BertLayerNorm (TF-style: eps inside the sqrt), all in f32.
    u = jnp.mean(x, axis=-1, keepdims=True)
    d = x - u
    s = jnp.mean(d * d, axis=-1, keepdims=True)
    xn = d * jax.lax.rsqrt(s + eps)          # rsqrt -> EUP slot (cheap)
    y = gamma_ref[...].astype(jnp.float32) * xn + beta_ref[...].astype(jnp.float32)
    o_ref[...] = y.astype(o_ref.dtype)


def _round_up(x, m):
    return (x + m - 1) // m * m


def bert_output(hidden_states, input_tensor, weight, bias, gamma, beta,
                *, eps=1e-12, tm=256, compute_dtype=None):
    """hidden_states: (B, S, I), input_tensor: (B, S, H) -> (B, S, H).

    weight is the transposed Linear weight, shape (I, H).
    compute_dtype: optionally cast the matmul operands (e.g. jnp.bfloat16) —
    accumulation stays f32, LayerNorm epilogue stays f32.
    """
    B, S, I = hidden_states.shape
    H = input_tensor.shape[-1]
    M = B * S

    assert H % 128 == 0, "hidden size must be a multiple of 128 (lane width)"
    assert weight.shape == (I, H)

    out_dtype = hidden_states.dtype
    if compute_dtype is not None:
        hidden_states = hidden_states.astype(compute_dtype)
        weight = weight.astype(compute_dtype)

    h2 = hidden_states.reshape(M, I)
    r2 = input_tensor.reshape(M, H)
    b2 = bias.reshape(1, H)
    g2 = gamma.reshape(1, H)
    be2 = beta.reshape(1, H)

    # Row-tile size: multiple of 8 sublanes, never larger than (padded) M.
    tm_eff = min(tm, _round_up(M, 8))
    tm_eff = _round_up(tm_eff, 8)
    M_pad = _round_up(M, tm_eff)
    if M_pad != M:
        h2 = jnp.pad(h2, ((0, M_pad - M), (0, 0)))
        r2 = jnp.pad(r2, ((0, M_pad - M), (0, 0)))

    grid = (M_pad // tm_eff,)

    # Explicit VMEM budget: double-buffered h/residual/out tiles + resident weight.
    esz = h2.dtype.itemsize
    osz = jnp.dtype(out_dtype).itemsize
    vmem_bytes = (2 * tm_eff * I * esz            # hidden tile (double-buffered)
                  + 2 * I * H * esz               # weight (resident, budget 2x)
                  + 2 * tm_eff * H * r2.dtype.itemsize   # residual tile
                  + 2 * tm_eff * H * osz          # output tile
                  + 8 * H * 4                     # bias / gamma / beta
                  + (8 << 20))                    # headroom for compiler temps
    vmem_limit = min(max(vmem_bytes, 32 << 20), 64 << 20)

    kernel = functools.partial(bert_output_kernel, eps=eps)

    out = pl.pallas_call(
        kernel,
        out_shape=jax.ShapeDtypeStruct((M_pad, H), out_dtype),
        grid_spec=pltpu.PrefetchScalarGridSpec(
            num_scalar_prefetch=0,
            grid=grid,
            in_specs=[
                pl.BlockSpec((tm_eff, I), lambda i: (i, 0)),   # hidden rows tile
                pl.BlockSpec((I, H), lambda i: (0, 0)),        # weight (VMEM-resident)
                pl.BlockSpec((1, H), lambda i: (0, 0)),        # bias
                pl.BlockSpec((tm_eff, H), lambda i: (i, 0)),   # residual rows tile
                pl.BlockSpec((1, H), lambda i: (0, 0)),        # LN gamma
                pl.BlockSpec((1, H), lambda i: (0, 0)),        # LN beta
            ],
            out_specs=pl.BlockSpec((tm_eff, H), lambda i: (i, 0)),
        ),
        compiler_params=pltpu.CompilerParams(
            dimension_semantics=("parallel",),   # row tiles shard across TCs on v7x
            vmem_limit_bytes=vmem_limit,
        ),
    )(h2, weight, b2, r2, g2, be2)

    if M_pad != M:
        out = out[:M]
    return out.reshape(B, S, H)


def reference(hidden_states, input_tensor, weight, bias, gamma, beta, eps=1e-12):
    x = hidden_states @ weight + bias
    x = x + input_tensor
    u = jnp.mean(x, axis=-1, keepdims=True)
    s = jnp.mean((x - u) ** 2, axis=-1, keepdims=True)
    xn = (x - u) / jnp.sqrt(s + eps)
    return gamma * xn + beta


if __name__ == "__main__":
    # Small, TPU-tile-friendly shapes consistent with BertOutput's forward.
    B, S = 2, 8
    INTERMEDIATE, HIDDEN = 256, 128
    eps = 1e-12

    key = jax.random.PRNGKey(0)
    k1, k2, k3, k4, k5 = jax.random.split(key, 5)

    hidden_states = jax.random.normal(k1, (B, S, INTERMEDIATE), dtype=jnp.float32)
    input_tensor = jax.random.normal(k2, (B, S, HIDDEN), dtype=jnp.float32)

    # Deterministic parameter init (Linear weight stored as (I, H) = W^T).
    weight = jax.random.normal(k3, (INTERMEDIATE, HIDDEN), dtype=jnp.float32) * 0.02
    bias = jax.random.normal(k4, (HIDDEN,), dtype=jnp.float32) * 0.02
    gamma = jnp.ones((HIDDEN,), dtype=jnp.float32)
    beta = jnp.zeros((HIDDEN,), dtype=jnp.float32)

    out = bert_output(hidden_states, input_tensor, weight, bias, gamma, beta, eps=eps)
    out = jax.block_until_ready(out)

    ref = reference(hidden_states, input_tensor, weight, bias, gamma, beta, eps=eps)
    assert out.shape == (B, S, HIDDEN)
    assert jnp.allclose(out, ref, atol=1e-4, rtol=1e-4), "mismatch vs reference"

    print("KERNEL_OK")
</pallas_src>

<mosaic_0001>
module attributes {stable_mosaic.version = 11 : i64} {
  func.func @bert_output_kernel(%arg0: i32, %arg1: memref<16x256xf32, #tpu.memory_space<vmem>>, %arg2: memref<256x128xf32, #tpu.memory_space<vmem>>, %arg3: memref<1x128xf32, #tpu.memory_space<vmem>>, %arg4: memref<16x128xf32, #tpu.memory_space<vmem>>, %arg5: memref<1x128xf32, #tpu.memory_space<vmem>>, %arg6: memref<1x128xf32, #tpu.memory_space<vmem>>, %arg7: memref<16x128xf32, #tpu.memory_space<vmem>>) attributes {dimension_semantics = [#tpu.dimension_semantics<parallel>], iteration_bounds = array<i64: 1>, scalar_prefetch = 0 : i64, scratch_operands = 0 : i64, tpu.core_type = #tpu.core_type<tc>, window_params = [{transform_indices = @transform_0, window_bounds = array<i64: 16, 256>}, {pipeline_mode = #tpu.pipeline_mode<synchronous>, transform_indices = @transform_1, window_bounds = array<i64: 256, 128>}, {pipeline_mode = #tpu.pipeline_mode<synchronous>, transform_indices = @transform_2, window_bounds = array<i64: 1, 128>}, {transform_indices = @transform_3, window_bounds = array<i64: 16, 128>}, {pipeline_mode = #tpu.pipeline_mode<synchronous>, transform_indices = @transform_4, window_bounds = array<i64: 1, 128>}, {pipeline_mode = #tpu.pipeline_mode<synchronous>, transform_indices = @transform_5, window_bounds = array<i64: 1, 128>}, {transform_indices = @transform_6, window_bounds = array<i64: 16, 128>}]} {
    %c0 = arith.constant 0 : index
    %c0_0 = arith.constant 0 : index
    %0 = vector.load %arg1[%c0, %c0_0] : memref<16x256xf32, #tpu.memory_space<vmem>>, vector<16x256xf32>
    %c0_1 = arith.constant 0 : index
    %c0_2 = arith.constant 0 : index
    %1 = vector.load %arg2[%c0_1, %c0_2] : memref<256x128xf32, #tpu.memory_space<vmem>>, vector<256x128xf32>
    %cst = arith.constant dense<0.000000e+00> : vector<16x128xf32>
    %2 = tpu.matmul %0, %1, %cst {dimension_numbers = #tpu.dot_dimension_numbers<[1], [0], [0], [1], [0, 0, 1, 1], [], []>} : vector<16x256xf32>, vector<256x128xf32>, vector<16x128xf32> -> vector<16x128xf32>
    %c0_3 = arith.constant 0 : index
    %c0_4 = arith.constant 0 : index
    %3 = vector.load %arg3[%c0_3, %c0_4] : memref<1x128xf32, #tpu.memory_space<vmem>>, vector<1x128xf32>
    %4 = vector.broadcast %3 : vector<1x128xf32> to vector<16x128xf32>
    %5 = arith.addf %2, %4 : vector<16x128xf32>
    %c0_5 = arith.constant 0 : index
    %c0_6 = arith.constant 0 : index
    %6 = vector.load %arg4[%c0_5, %c0_6] : memref<16x128xf32, #tpu.memory_space<vmem>>, vector<16x128xf32>
    %7 = arith.addf %5, %6 : vector<16x128xf32>
    %cst_7 = arith.constant dense<0.000000e+00> : vector<16xf32>
    %8 = vector.multi_reduction <add>, %7, %cst_7 [1] : vector<16x128xf32> to vector<16xf32>
    %9 = vector.shape_cast %8 : vector<16xf32> to vector<16x1xf32>
    %cst_8 = arith.constant 1.280000e+02 : f32
    %10 = vector.broadcast %cst_8 : f32 to vector<16x1xf32>
    %11 = arith.divf %9, %10 : vector<16x1xf32>
    %12 = vector.broadcast %11 : vector<16x1xf32> to vector<16x128xf32>
    %13 = arith.subf %7, %12 : vector<16x128xf32>
    %14 = arith.mulf %13, %13 : vector<16x128xf32>
    %cst_9 = arith.constant dense<0.000000e+00> : vector<16xf32>
    %15 = vector.multi_reduction <add>, %14, %cst_9 [1] : vector<16x128xf32> to vector<16xf32>
    %16 = vector.shape_cast %15 : vector<16xf32> to vector<16x1xf32>
    %cst_10 = arith.constant 1.280000e+02 : f32
    %17 = vector.broadcast %cst_10 : f32 to vector<16x1xf32>
    %18 = arith.divf %16, %17 : vector<16x1xf32>
    %cst_11 = arith.constant 9.99999996E-13 : f32
    %19 = vector.broadcast %cst_11 : f32 to vector<16x1xf32>
    %20 = arith.addf %18, %19 : vector<16x1xf32>
    %21 = math.rsqrt %20 : vector<16x1xf32>
    %22 = vector.broadcast %21 : vector<16x1xf32> to vector<16x128xf32>
    %23 = arith.mulf %13, %22 : vector<16x128xf32>
    %c0_12 = arith.constant 0 : index
    %c0_13 = arith.constant 0 : index
    %24 = vector.load %arg5[%c0_12, %c0_13] : memref<1x128xf32, #tpu.memory_space<vmem>>, vector<1x128xf32>
    %25 = vector.broadcast %24 : vector<1x128xf32> to vector<16x128xf32>
    %26 = arith.mulf %25, %23 : vector<16x128xf32>
    %c0_14 = arith.constant 0 : index
    %c0_15 = arith.constant 0 : index
    %27 = vector.load %arg6[%c0_14, %c0_15] : memref<1x128xf32, #tpu.memory_space<vmem>>, vector<1x128xf32>
    %28 = vector.broadcast %27 : vector<1x128xf32> to vector<16x128xf32>
    %29 = arith.addf %26, %28 : vector<16x128xf32>
    %c0_16 = arith.constant 0 : index
    %c0_17 = arith.constant 0 : index
    %30 = vector.load %arg7[%c0_16, %c0_17] : memref<16x128xf32, #tpu.memory_space<vmem>>, vector<16x128xf32>
    tpu.vector_store %arg7[%c0_16, %c0_17], %29 {strides = array<i32>} : memref<16x128xf32, #tpu.memory_space<vmem>>, vector<16x128xf32>,
    return
  }
  func.func @transform_0(%arg0: i32) -> (i32, i32) {
    %c0_i32 = arith.constant 0 : i32
    %c0_i32_0 = arith.constant 0 : i32
    return %arg0, %c0_i32 : i32, i32
  }
  func.func @transform_1(%arg0: i32) -> (i32, i32) {
    %c0_i32 = arith.constant 0 : i32
    %c0_i32_0 = arith.constant 0 : i32
    %c0_i32_1 = arith.constant 0 : i32
    return %c0_i32, %c0_i32_0 : i32, i32
  }
  func.func @transform_2(%arg0: i32) -> (i32, i32) {
    %c0_i32 = arith.constant 0 : i32
    %c0_i32_0 = arith.constant 0 : i32
    %c0_i32_1 = arith.constant 0 : i32
    return %c0_i32, %c0_i32_0 : i32, i32
  }
  func.func @transform_3(%arg0: i32) -> (i32, i32) {
    %c0_i32 = arith.constant 0 : i32
    %c0_i32_0 = arith.constant 0 : i32
    return %arg0, %c0_i32 : i32, i32
  }
  func.func @transform_4(%arg0: i32) -> (i32, i32) {
    %c0_i32 = arith.constant 0 : i32
    %c0_i32_0 = arith.constant 0 : i32
    %c0_i32_1 = arith.constant 0 : i32
    return %c0_i32, %c0_i32_0 : i32, i32
  }
  func.func @transform_5(%arg0: i32) -> (i32, i32) {
    %c0_i32 = arith.constant 0 : i32
    %c0_i32_0 = arith.constant 0 : i32
    %c0_i32_1 = arith.constant 0 : i32
    return %c0_i32, %c0_i32_0 : i32, i32
  }
  func.func @transform_6(%arg0: i32) -> (i32, i32) {
    %c0_i32 = arith.constant 0 : i32
    %c0_i32_0 = arith.constant 0 : i32
    return %arg0, %c0_i32 : i32, i32
  }
}

</mosaic_0001>

<bundles_post_ra>
// kernel: tpu_custom_call.1
= control target key start
LH: loop header
LB: loop body
LE: loop exit
PB: predicated region body
PF: predicated region fallthrough
CT: control target
= control target key end

     0   :  { %11 = vsyncpa [#allocation3], 0  ;;  %s552_s0 = inlined_call_operand.hbm [shape: f32[16,256], index: 0, kind: input, shape index: {}]   ;;  %s553_s1 = inlined_call_operand.hbm [shape: f32[256,128], index: 1, kind: input, shape index: {}]   ;;  %s554_s2 = inlined_call_operand.vmem [shape: f32[1,128], index: 2, kind: input, shape index: {}]   ;;  %s555_s3 = inlined_call_operand.hbm [shape: f32[16,128], index: 3, kind: input, shape index: {}]   ;;  %s556_s4 = inlined_call_operand.vmem [shape: f32[1,128], index: 4, kind: input, shape index: {}]   ;;  %s557_s5 = inlined_call_operand.vmem [shape: f32[1,128], index: 5, kind: input, shape index: {}]   ;;  %s558_s6 = inlined_call_operand.hbm [shape: f32[16,128], index: 6, kind: output, shape index: {}]  }
   0x1   :  { %12 = vsyncpa [#allocation6], 0 }
   0x2   :  { %13 = vsyncpa [#allocation4], 0  ;;  %s443_s21 = smov [#allocation5]   ;;  %s349_s25 = scalar_lea.hbm %s553_s1, 4096 }
   0x3   :  { %s31_s22 = sshll.u32 %s443_s21, 4  ;;  %p350_p0 = scmp.ne.s32.totalorder %s553_s1, %s349_s25  ;;  %s32_s22 = int_to_ptr.vmem [resolvable:$true] %s31_s22 }
   0x4   :  { %p353_p1 = scmp.lt.u32.totalorder %s349_s25, %s553_s1 }
   0x6   :  { %p355_p2 = pnand %p353_p1, %p350_p0 }
   0x8   :  { %358 = shalt.err (!%p355_p2)
}
   0x9   :  { %s359_s30 = scalar_lea.vmem %s32_s22, 4096  ;;  %p364_p4 = scmp.lt.s32.totalorder %s32_s22, %s32_s22 }
   0xa   :  { %p360_p3 = scmp.ne.s32.totalorder %s32_s22, %s359_s30  ;;  %p365_p5 = scmp.lt.s32.totalorder %s359_s30, %s359_s30 }
   0xc   :  { %p366_p6 = por %p365_p5, %p364_p4 }
   0xe   :  { %p367_p7 = pnand %p366_p6, %p360_p3 }
  0x10   :  { %370 = shalt.err (!%p367_p7)
}
  0x11   :  { %s444_s7 = smov 128   ;;  %s445_s8 = smov 8  }
  0x12   :  { %37 = dma.hbm_to_vmem [thread:$0]  %s553_s1, 4096, %s32_s22, [#allocation6], %s444_s7, %s444_s7, %s445_s8  }
  0x13   :  { %s446_s11 = smov [#allocation2]   ;;  %s371_s15 = scalar_lea.hbm %s552_s0, 512 }
  0x14   :  { %s19_s12 = sshll.u32 %s446_s11, 4  ;;  %p372_p8 = scmp.ne.s32.totalorder %s552_s0, %s371_s15  ;;  %s20_s12 = int_to_ptr.vmem [resolvable:$true] %s19_s12 }
  0x15   :  { %p375_p9 = scmp.lt.u32.totalorder %s371_s15, %s552_s0 }
  0x17   :  { %p377_p10 = pnand %p375_p9, %p372_p8 }
  0x19   :  { %380 = shalt.err (!%p377_p10)
}
  0x1a   :  { %s381_s20 = scalar_lea.vmem %s20_s12, 512  ;;  %p386_p12 = scmp.lt.s32.totalorder %s20_s12, %s20_s12 }
  0x1b   :  { %p382_p11 = scmp.ne.s32.totalorder %s20_s12, %s381_s20  ;;  %p387_p13 = scmp.lt.s32.totalorder %s381_s20, %s381_s20 }
  0x1d   :  { %p388_p0 = por %p387_p13, %p386_p12 }
  0x1f   :  { %p389_p1 = pnand %p388_p0, %p382_p11 }
  0x21   :  { %392 = shalt.err (!%p389_p1)
}
  0x22   :  { %s447_s1 = smov 256   ;;  %s448_s21 = smov 16  }
  0x23   :  { %25 = dma.hbm_to_vmem [thread:$0]  %s552_s0, 512, %s20_s12, [#allocation3], %s447_s1, %s447_s1, %s448_s21  }
  0x24   :  { %s449_s24 = smov [#allocation7]   ;;  %s393_s28 = scalar_lea.hbm %s555_s3, 256 }
  0x25   :  { %s45_s25 = sshll.u32 %s449_s24, 4  ;;  %p394_p2 = scmp.ne.s32.totalorder %s555_s3, %s393_s28  ;;  %s46_s25 = int_to_ptr.vmem [resolvable:$true] %s45_s25 }
  0x26   :  { %p397_p3 = scmp.lt.u32.totalorder %s393_s28, %s555_s3 }
  0x28   :  { %p399_p4 = pnand %p397_p3, %p394_p2 }
  0x2a   :  { %402 = shalt.err (!%p399_p4)
}
  0x2b   :  { %s403_s11 = scalar_lea.vmem %s46_s25, 256  ;;  %p408_p6 = scmp.lt.s32.totalorder %s46_s25, %s46_s25 }
  0x2c   :  { %p404_p5 = scmp.ne.s32.totalorder %s46_s25, %s403_s11  ;;  %p409_p7 = scmp.lt.s32.totalorder %s403_s11, %s403_s11 }
  0x2e   :  { %p410_p8 = por %p409_p7, %p408_p6 }
  0x30   :  { %p411_p9 = pnand %p410_p8, %p404_p5 }
  0x32   :  { %414 = shalt.err (!%p411_p9)
}
  0x33   :  { %51 = dma.hbm_to_vmem [thread:$0]  %s555_s3, 256, %s46_s25, [#allocation6], %s444_s7, %s444_s7, %s445_s8  }
  0x34   :  { %437 = dma.done.wait [#allocation3], 512  }
  0x35   :  { %438 = vsyncadd [#allocation3], 4294966784 }
  0x36   :  { %439 = dma.done.wait [#allocation6], 4352  }
  0x37   :  { %440 = vsyncadd [#allocation6], 4294962944  ;;  %v85_v0 = vld [vmem:[#allocation5 + $0x80] sm:$0xff]  ;;  %v86_v1 = vld [vmem:[#allocation5 + $0x88] sm:$0xff]  ;;  %s450_s17 = smov [#allocation8]  }
  0x38   :  { %v69_v2 = vld [vmem:[#allocation5] sm:$0xff]  ;;  %v289_v3 = vpack.c.bf16 %v86_v1, %v85_v0  ;;  %v70_v4 = vld [vmem:[#allocation5 + $0x8] sm:$0xff]  ;;  %v87_v5 = vld [vmem:[#allocation5 + $0x90] sm:$0xff]  ;;  %s235_s18 = sshll.u32 %s450_s17, 4  ;;  %s236_s18 = int_to_ptr.vmem [resolvable:$true] %s235_s18 }
  0x39   :  { %v88_v6 = vld [vmem:[#allocation5 + $0x98] sm:$0xff]  ;;  %v291_v7 = vpack.c.bf16 %v70_v4, %v69_v2  ;;  %v71_v9 = vld [vmem:[#allocation5 + $0x10] sm:$0xff]  ;;  %v89_v11 = vld [vmem:[#allocation5 + $0xa0] sm:$0xff]  ;;  %s415_s19 = scalar_lea.vmem %s236_s18, 256  ;;  %p420_p11 = scmp.lt.s32.totalorder %s236_s18, %s236_s18 }
  0x3a   :  { %v293_v8 = vpack.c.bf16 %v88_v6, %v87_v5  ;;  %v72_v10 = vld [vmem:[#allocation5 + $0x18] sm:$0xff]  ;;  %290 = vmatprep.subr.bf16.mxu0 %v289_v3  ;;  %321 = vmatprep.subr.bf16.mxu1 %v289_v3  ;;  %v90_v12 = vld [vmem:[#allocation5 + $0xa8] sm:$0xff]  ;;  %v73_v15 = vld [vmem:[#allocation5 + $0x20] sm:$0xff]  ;;  %p416_p10 = scmp.ne.s32.totalorder %s236_s18, %s415_s19  ;;  %p421_p12 = scmp.lt.s32.totalorder %s415_s19, %s415_s19 }
  0x3b   :  { %292 = vmatpush3.bf16.msra.mxu0 %v291_v7  ;;  %329 = vmatpush3.bf16.msra.mxu1 %v291_v7  ;;  %v295_v13 = vpack.c.bf16 %v72_v10, %v71_v9  ;;  %v297_v14 = vpack.c.bf16 %v90_v12, %v89_v11  ;;  %v74_v16 = vld [vmem:[#allocation5 + $0x28] sm:$0xff]  ;;  %v91_v17 = vld [vmem:[#allocation5 + $0xb0] sm:$0xff]  ;;  %v92_v18 = vld [vmem:[#allocation5 + $0xb8] sm:$0xff] }
  0x3c   :  { %294 = vmatprep.subr.bf16.mxu0 %v293_v8  ;;  %322 = vmatprep.subr.bf16.mxu1 %v293_v8  ;;  %v299_v19 = vpack.c.bf16 %v74_v16, %v73_v15  ;;  %v301_v20 = vpack.c.bf16 %v92_v18, %v91_v17  ;;  %v75_v21 = vld [vmem:[#allocation5 + $0x30] sm:$0xff]  ;;  %v76_v22 = vld [vmem:[#allocation5 + $0x38] sm:$0xff]  ;;  %v93_v23 = vld [vmem:[#allocation5 + $0xc0] sm:$0xff]  ;;  %p422_p13 = por %p421_p12, %p420_p11 }
  0x3d   :  { %v94_v24 = vld [vmem:[#allocation5 + $0xc8] sm:$0xff]  ;;  %v68_v26 = vld [vmem:[#allocation2 + $0x18] sm:$0xff]  ;;  %v303_v27 = vpack.c.bf16 %v76_v22, %v75_v21  ;;  %v77_v29 = vld [vmem:[#allocation5 + $0x40] sm:$0xff] }
  0x3e   :  { %v66_v25 = vld [vmem:[#allocation2 + $0x8] sm:$0xff]  ;;  %v305_v28 = vpack.c.bf16 %v94_v24, %v93_v23  ;;  %v95_v31 = vld [vmem:[#allocation5 + $0xd0] sm:$0xff]  ;;  %v96_v32 = vld [vmem:[#allocation5 + $0xd8] sm:$0xff]  ;;  %177 = vmatprep.mubr.f32.mxu1 %v68_v26  ;;  %p423_p0 = pnand %p422_p13, %p416_p10 }
  0x3f   :  { %296 = vmatpush3.bf16.msra.mxu0 %v295_v13  ;;  %330 = vmatpush3.bf16.msra.mxu1 %v295_v13  ;;  %v78_v30 = vld [vmem:[#allocation5 + $0x48] sm:$0xff]  ;;  %v309_v34 = vpack.c.bf16 %v96_v32, %v95_v31  ;;  %v79_v35 = vld [vmem:[#allocation5 + $0x50] sm:$0xff]  ;;  %v80_v36 = vld [vmem:[#allocation5 + $0x58] sm:$0xff] }
  0x40   :  { %298 = vmatprep.subr.bf16.mxu0 %v297_v14  ;;  %323 = vmatprep.subr.bf16.mxu1 %v297_v14  ;;  %v307_v33 = vpack.c.bf16 %v78_v30, %v77_v29  ;;  %v97_v37 = vld [vmem:[#allocation5 + $0xe0] sm:$0xff]  ;;  %v98_v38 = vld [vmem:[#allocation5 + $0xe8] sm:$0xff]  ;;  %v311_v39 = vpack.c.bf16 %v80_v36, %v79_v35  ;;  %v99_v43 = vld [vmem:[#allocation5 + $0xf0] sm:$0xff] }
  0x41   :  { %172 = vmatprep.mubr.f32.mxu0 %v66_v25  ;;  %v313_v40 = vpack.c.bf16 %v98_v38, %v97_v37  ;;  %v81_v41 = vld [vmem:[#allocation5 + $0x60] sm:$0xff]  ;;  %v82_v42 = vld [vmem:[#allocation5 + $0x68] sm:$0xff]  ;;  %v100_v44 = vld [vmem:[#allocation5 + $0xf8] sm:$0xff] }
  0x42   :  { %v315_v45 = vpack.c.bf16 %v82_v42, %v81_v41  ;;  %v317_v46 = vpack.c.bf16 %v100_v44, %v99_v43  ;;  %v83_v47 = vld [vmem:[#allocation5 + $0x70] sm:$0xff]  ;;  %v84_v48 = vld [vmem:[#allocation5 + $0x78] sm:$0xff]  ;;  %v65_v50 = vld [vmem:[#allocation2] sm:$0xff] }
  0x43   :  { %300 = vmatpush3.bf16.msra.mxu0 %v299_v19  ;;  %331 = vmatpush3.bf16.msra.mxu1 %v299_v19  ;;  %v319_v49 = vpack.c.bf16 %v84_v48, %v83_v47  ;;  %v67_v51 = vld [vmem:[#allocation2 + $0x10] sm:$0xff]  ;;  %v248_v54 = vld [vmem:[%s554_s2] ss:$0 sm:$0xff]  ;;  %v184_v62 = vld [vmem:[#allocation7 + $0x8] sm:$0xff] }
  0x44   :  { %302 = vmatprep.subr.bf16.mxu0 %v301_v20  ;;  %324 = vmatprep.subr.bf16.mxu1 %v301_v20  ;;  %v183_v59 = vld [vmem:[#allocation7] sm:$0xff] }
  0x45   :  { %v249_v16 = vld [vmem:[%s556_s4] ss:$0 sm:$0xff] }
  0x46   :  { %v250_v18 = vld [vmem:[%s557_s5] ss:$0 sm:$0xff] }
  0x47   :  { %304 = vmatpush3.bf16.msra.mxu0 %v303_v27  ;;  %332 = vmatpush3.bf16.msra.mxu1 %v303_v27 }
  0x48   :  { %306 = vmatprep.subr.bf16.mxu0 %v305_v28  ;;  %325 = vmatprep.subr.bf16.mxu1 %v305_v28 }
  0x4b   :  { %308 = vmatpush3.bf16.msra.mxu0 %v307_v33  ;;  %333 = vmatpush3.bf16.msra.mxu1 %v307_v33 }
  0x4c   :  { %310 = vmatprep.subr.bf16.mxu0 %v309_v34  ;;  %326 = vmatprep.subr.bf16.mxu1 %v309_v34 }
  0x4f   :  { %312 = vmatpush3.bf16.msra.mxu0 %v311_v39  ;;  %334 = vmatpush3.bf16.msra.mxu1 %v311_v39 }
  0x50   :  { %314 = vmatprep.subr.bf16.mxu0 %v313_v40  ;;  %327 = vmatprep.subr.bf16.mxu1 %v313_v40 }
  0x53   :  { %316 = vmatpush3.bf16.msra.mxu0 %v315_v45  ;;  %335 = vmatpush3.bf16.msra.mxu1 %v315_v45 }
  0x54   :  { %318 = vmatprep.subr.bf16.mxu0 %v317_v46  ;;  %328 = vmatprep.subr.bf16.mxu1 %v317_v46 }
  0x57   :  { %320 = vmatpush3.bf16.msra.mxu0 %v319_v49  ;;  %336 = vmatpush3.bf16.msra.mxu1 %v319_v49 }
  0x5a   :  { %173 = vmatmul.mubr.f32.vlgmr.msra.gmra.mrb[0].mxu0 %v65_v50  ;;  %178 = vmatmul.mubr.f32.vlgmr.msra.gmra.mrb[0].mxu1 %v67_v51 }
 0x12d   :  { %v283_v52 = vpop.f32.mrb[0].mxu0  ;;  %v286_v53 = vpop.f32.mrb[0].mxu1 }
 0x12e   :  { %v284_v55 = vpop.f32.mrb[1].mxu0  ;;  %v287_v56 = vpop.f32.mrb[1].mxu1 }
 0x12f   :  { %v285_v57 = vadd.f32 %v284_v55, %v283_v52  ;;  %v288_v58 = vadd.f32 %v287_v56, %v286_v53 }
 0x131   :  { %v175_v60 = vadd.f32 %v285_v57, %v248_v54  ;;  %v180_v61 = vadd.f32 %v288_v58, %v248_v54 }
 0x133   :  { %v185_v63 = vadd.f32 %v183_v59, %v175_v60  ;;  %v186_v0 = vadd.f32 %v184_v62, %v180_v61 }
 0x135   :  { %187 = vadd.xlane.f32.xlu0 %v185_v63 }
 0x139   :  { %189 = vadd.xlane.f32.xlu0 %v186_v0 }
 0x1c2   :  { %v188_v1 = vpop.xlane.xlu0 %187 }
 0x1c3   :  { %v192_v2 = vmul.f32 0.0078125, %v188_v1 }
 0x1c5   :  { %v194_v3 = vsub.f32 %v185_v63, %v192_v2 }
 0x1c6   :  { %v190_v4 = vpop.xlane.xlu0 %189 }
 0x1c7   :  { %v193_v5 = vmul.f32 0.0078125, %v190_v4  ;;  %v196_v6 = vmul.f32 %v194_v3, %v194_v3 }
 0x1c9   :  { %v195_v7 = vsub.f32 %v186_v0, %v193_v5  ;;  %198 = vadd.xlane.f32.xlu1 %v196_v6 }
 0x1cb   :  { %v197_v8 = vmul.f32 %v195_v7, %v195_v7 }
 0x1cd   :  { %200 = vadd.xlane.f32.xlu1 %v197_v8 }
 0x256   :  { %v199_v9 = vpop.xlane.xlu1 %198 }
 0x257   :  { %v202_v10 = vmul.f32 0.0078125, %v199_v9 }
 0x259   :  { %v204_v11 = vadd.f32 1e-12, %v202_v10 }
 0x25a   :  { %v201_v12 = vpop.xlane.xlu1 %200 }
 0x25b   :  { %345 = vrsqrt.f32 %v204_v11  ;;  %v203_v13 = vmul.f32 0.0078125, %v201_v12 }
 0x25d   :  { %v205_v14 = vadd.f32 1e-12, %v203_v13 }
 0x25f   :  { %347 = vrsqrt.f32 %v205_v14 }
 0x265   :  { %v346_v15 = vpop.eup %345 }
 0x266   :  { %v208_v17 = vmul.f32 %v346_v15, %v194_v3 }
 0x268   :  { %v217_v19 = vmul.f32 %v249_v16, %v208_v17 }
 0x269   :  { %v348_v20 = vpop.eup %347 }
 0x26a   :  { %v209_v21 = vmul.f32 %v348_v20, %v195_v7  ;;  %v226_v22 = vadd.f32 %v250_v18, %v217_v19 }
 0x26c   :  { %v218_v23 = vmul.f32 %v249_v16, %v209_v21  ;;  %228 = vst [vmem:[#allocation8] sm:$0xff] %v226_v22 }
 0x26e   :  { %v227_v24 = vadd.f32 %v250_v18, %v218_v23 }
 0x270   :  { %229 = vst [vmem:[#allocation8 + $0x8] sm:$0xff] %v227_v24 }
 0x271   :  { %426 = shalt.err (!%p423_p0)
}
 0x272   :  { %s427_s20 = scalar_lea.hbm %s558_s6, 256 }
 0x273   :  { %p428_p1 = scmp.ne.s32.totalorder %s558_s6, %s427_s20  ;;  %p431_p2 = scmp.lt.u32.totalorder %s427_s20, %s558_s6 }
 0x275   :  { %p433_p3 = pnand %p431_p2, %p428_p1 }
 0x277   :  { %436 = shalt.err (!%p433_p3)
}
 0x278   :  { %241 = dma.vmem_to_hbm [thread:$0]  %s236_s18, 256, %s558_s6, [#allocation4], %s444_s7, %s444_s7, %s445_s8  }
 0x279   :  { %441 = dma.done.wait [#allocation4], 256  }
 0x27a   :  { %442 = vsyncadd [#allocation4], 4294967040 }
 0x27b   :  { %245 = vsyncpa [#allocation3], 1 }
 0x27c   :  { %246 = vsyncpa [#allocation6], 1 }
 0x27d   :  { %247 = vsyncpa [#allocation4], 1 }

</bundles_post_ra>
